<compile_context>
chip_gen: v7x
topology: tpu7x:2x2x1
jax: 0.10.0
libtpu: 0.0.40
codegen_flags: <defaults>
</compile_context>

<pallas_src>
import functools

import jax
import jax.numpy as jnp
from jax.experimental import pallas as pl
from jax.experimental.pallas import tpu as pltpu

BN_EPS = 1e-5
LEAKY_SLOPE = 0.01            # F.leaky_relu default negative_slope
LANES = 128
SUBLANES = 8
MAX_TILE_M = 4096             # rows per grid step (cap)
TILE_VMEM_BUDGET = 16 * 1024 * 1024    # per-tile working-set budget
VMEM_LIMIT_BYTES = 32 * 1024 * 1024    # scoped VMEM; safe on v5e/v6e/v7x


def _round_up(n, m):
    return (n + m - 1) // m * m


def _leaky_relu(x):
    return jnp.where(x > 0, x, LEAKY_SLOPE * x)


# ---------------- phase 1: fc1 matmul + per-tile partial column stats --------
def _stats_kernel(x_ref, w1_ref, stats_ref, *, tile_m, m_rows, needs_mask):
    # z = x @ w1 (bias omitted: a per-channel shift before BN cancels in the
    # normalized output, and variance is shift-invariant).
    z = jnp.dot(x_ref[...], w1_ref[...], preferred_element_type=jnp.float32)
    if needs_mask:
        row = (jax.lax.broadcasted_iota(jnp.int32, z.shape, 0)
               + pl.program_id(0) * tile_m)
        z = jnp.where(row < m_rows, z, 0.0)
    # Separate sublane-row stores (no concat relayout).
    stats_ref[0, 0:1, :] = jnp.sum(z, axis=0, keepdims=True)
    stats_ref[0, 1:2, :] = jnp.sum(z * z, axis=0, keepdims=True)


# -------- phase 2: fc1 (recomputed) + folded BN affine + fc2 + store ---------
def _apply_kernel(x_ref, w1_ref, scale_ref, shift_ref, w2_ref, b2_ref, o_ref):
    z = jnp.dot(x_ref[...], w1_ref[...], preferred_element_type=jnp.float32)
    a = _leaky_relu(z * scale_ref[...] + shift_ref[...])
    y = jnp.dot(a.astype(w2_ref.dtype), w2_ref[...],
                preferred_element_type=jnp.float32) + b2_ref[...]
    o_ref[...] = _leaky_relu(y).astype(o_ref.dtype)


def _choose_tile_m(m_rows, n_in, hp, n_out, in_bytes, out_bytes, max_tile_m):
    """Largest row tile (multiple of 8, <= max_tile_m) whose working set fits
    TILE_VMEM_BUDGET.  VMEM blocks are lane-padded to 128 regardless of the
    true minor width, so use padded widths in the estimate."""
    n_in_l = _round_up(n_in, LANES)
    n_out_l = _round_up(n_out, LANES)
    per_row = (2 * n_in_l * in_bytes       # double-buffered x tile
               + 2 * n_out_l * out_bytes   # double-buffered out tile
               + 2 * hp * 4)               # f32 z / a temporaries
    tm = TILE_VMEM_BUDGET // max(per_row, 1)
    tm = max(SUBLANES, min(max_tile_m, tm))
    tm = (tm // SUBLANES) * SUBLANES
    tm = min(tm, _round_up(m_rows, SUBLANES))
    return max(SUBLANES, tm)


def graph_encoder_mlp(x, params, *, max_tile_m=MAX_TILE_M):
    """x: (..., n_in), 2-D or 3-D like the PyTorch module.
    params = (w1 (n_in,H), b1 (H,), gamma (H,), beta (H,), w2 (H,n_out), b2)
    with Linear weights pre-transposed to (in, out)."""
    w1, b1, gamma, beta, w2, b2 = params
    del b1  # fc1 bias cancels exactly in training-mode BatchNorm forward.
    n_in, n_hidden = w1.shape
    n_out = w2.shape[1]
    lead = x.shape[:-1]
    m = 1
    for d in lead:
        m *= d
    x2 = x.reshape(m, n_in)

    # Lane-dense padding of the hidden dim only (zero cols/rows); the output
    # keeps its true width n_out.
    hp = _round_up(n_hidden, LANES)
    w1p = jnp.zeros((n_in, hp), w1.dtype).at[:, :n_hidden].set(w1)
    w2p = jnp.zeros((hp, n_out), w2.dtype).at[:n_hidden, :].set(w2)
    b2r = b2.astype(jnp.float32).reshape(1, n_out)

    in_bytes = x2.dtype.itemsize
    tile_m = _choose_tile_m(m, n_in, hp, n_out, in_bytes, x.dtype.itemsize,
                            max_tile_m)
    n_tiles = pl.cdiv(m, tile_m)
    needs_mask = (m % tile_m) != 0

    x_spec = pl.BlockSpec((tile_m, n_in), lambda i: (i, 0))
    const2 = lambda shape: pl.BlockSpec(shape, lambda i: (0, 0))

    # ---- phase 1: per-tile partial (sum, sumsq) of z = x @ w1 over rows -----
    partials = pl.pallas_call(
        functools.partial(_stats_kernel, tile_m=tile_m, m_rows=m,
                          needs_mask=needs_mask),
        out_shape=jax.ShapeDtypeStruct((n_tiles, 2, hp), jnp.float32),
        grid=(n_tiles,),
        in_specs=[x_spec, const2((n_in, hp))],
        out_specs=pl.BlockSpec((1, 2, hp), lambda i: (i, 0, 0)),
        compiler_params=pltpu.CompilerParams(
            dimension_semantics=("parallel",),
            vmem_limit_bytes=VMEM_LIMIT_BYTES),
        cost_estimate=pl.CostEstimate(
            flops=2 * m * n_in * hp + 3 * m * hp,
            transcendentals=0,
            bytes_accessed=m * n_in * in_bytes
            + n_in * hp * w1p.dtype.itemsize + n_tiles * 2 * hp * 4),
    )(x2, w1p)

    # ---- wrapper: merge partials; fold BN into a per-channel affine (f32) ---
    # TODO(synk): E[z^2] - E[z]^2 in f32 can cancel when |mean| >> std; per-tile
    # Welford (count, mean, M2) partials would be more robust for huge M.
    stats = jnp.sum(partials, axis=0)                      # (2, hp)
    mean_z = stats[0:1, :] * (1.0 / m)
    var = jnp.maximum(stats[1:2, :] * (1.0 / m) - mean_z * mean_z, 0.0)
    gamma_p = jnp.zeros((1, hp), jnp.float32).at[:, :n_hidden].set(
        gamma.astype(jnp.float32))
    beta_p = jnp.zeros((1, hp), jnp.float32).at[:, :n_hidden].set(
        beta.astype(jnp.float32))
    scale = gamma_p * jax.lax.rsqrt(var + BN_EPS)
    shift = beta_p - mean_z * scale   # BN(x@w1 + b1) == z*scale + shift

    # ---- phase 2: recompute fc1 (K = n_in is tiny), affine + leaky_relu,
    # fc2, leaky_relu, store at true n_out width (no padding, no slice). ------
    out = pl.pallas_call(
        _apply_kernel,
        out_shape=jax.ShapeDtypeStruct((m, n_out), x.dtype),
        grid=(n_tiles,),
        in_specs=[x_spec, const2((n_in, hp)), const2((1, hp)),
                  const2((1, hp)), const2((hp, n_out)), const2((1, n_out))],
        out_specs=pl.BlockSpec((tile_m, n_out), lambda i: (i, 0)),
        compiler_params=pltpu.CompilerParams(
            dimension_semantics=("parallel",),
            vmem_limit_bytes=VMEM_LIMIT_BYTES),
        cost_estimate=pl.CostEstimate(
            flops=2 * m * hp * (n_in + n_out) + 6 * m * hp,
            transcendentals=0,
            bytes_accessed=m * n_in * in_bytes + m * n_out * x.dtype.itemsize
            + (n_in * hp + hp * n_out) * w1p.dtype.itemsize
            + (2 * hp + n_out) * 4),
    )(x2, w1p, scale, shift, w2p, b2r)

    return out.reshape(*lead, n_out)


def init_params(key, n_in, n_hidden, n_out):
    """Parameter init mirroring the PyTorch module shapes: xavier_normal
    Linear weights stored TRANSPOSED as (in, out); PyTorch-default uniform
    biases; BatchNorm affine gamma=1, beta=0."""
    k1, k2, k3, k4 = jax.random.split(key, 4)
    std1 = (2.0 / (n_in + n_hidden)) ** 0.5
    std2 = (2.0 / (n_hidden + n_out)) ** 0.5
    w1 = jax.random.normal(k1, (n_in, n_hidden), jnp.float32) * std1
    w2 = jax.random.normal(k2, (n_hidden, n_out), jnp.float32) * std2
    b1 = jax.random.uniform(k3, (n_hidden,), jnp.float32,
                            -1.0 / n_in ** 0.5, 1.0 / n_in ** 0.5)
    b2 = jax.random.uniform(k4, (n_out,), jnp.float32,
                            -1.0 / n_hidden ** 0.5, 1.0 / n_hidden ** 0.5)
    gamma = jnp.ones((n_hidden,), jnp.float32)
    beta = jnp.zeros((n_hidden,), jnp.float32)
    return w1, b1, gamma, beta, w2, b2


def _reference(x, params):
    """Pure-JAX f32 reference of the PyTorch forward (training-mode BN)."""
    w1, b1, gamma, beta, w2, b2 = params
    lead = x.shape[:-1]
    h = x.reshape(-1, x.shape[-1]).astype(jnp.float32) @ w1 + b1
    mu = h.mean(0, keepdims=True)
    var = ((h - mu) ** 2).mean(0, keepdims=True)
    h = (h - mu) / jnp.sqrt(var + BN_EPS) * gamma + beta
    h = _leaky_relu(h)
    y = _leaky_relu(h @ w2 + b2)
    return y.reshape(*lead, -1)


if __name__ == "__main__":
    key = jax.random.PRNGKey(0)
    kx, kp, kx2 = jax.random.split(key, 3)

    B, S, n_in, n_hidden, n_out = 2, 8, 16, 32, 16
    params = init_params(kp, n_in, n_hidden, n_out)

    # 3-D branch (B, S, n_in): BN over hidden channels across all B*S rows.
    x3 = jax.random.normal(kx, (B, S, n_in), jnp.float32)
    y3 = jax.block_until_ready(graph_encoder_mlp(x3, params))
    ref3 = _reference(x3, params)
    assert y3.shape == (B, S, n_out)
    assert jnp.max(jnp.abs(y3 - ref3)) < 1e-2, "3-D kernel mismatch vs reference"

    # 2-D branch, single-tile fast path (tile_m grows to cover all rows).
    M2 = 2400
    x2 = jax.random.normal(kx2, (M2, n_in), jnp.float32)
    y2 = jax.block_until_ready(graph_encoder_mlp(x2, params))
    ref2 = _reference(x2, params)
    assert y2.shape == (M2, n_out)
    assert jnp.max(jnp.abs(y2 - ref2)) < 1e-2, "2-D kernel mismatch vs reference"

    # Multi-tile grid with a partial, row-masked last tile (M % tile != 0),
    # exercising the unpadded-M path and parallel per-tile stats partials.
    y2t = jax.block_until_ready(graph_encoder_mlp(x2, params, max_tile_m=512))
    assert jnp.max(jnp.abs(y2t - ref2)) < 1e-2, "multi-tile kernel mismatch"

    # bf16 activations/weights fed natively to the MXU (f32 BN math inside).
    xb = x2.astype(jnp.bfloat16)
    pb = tuple(p.astype(jnp.bfloat16) if p.ndim == 2 else p for p in params)
    yb = jax.block_until_ready(graph_encoder_mlp(xb, pb))
    assert jnp.max(jnp.abs(yb.astype(jnp.float32) - ref2)) < 0.15, "bf16 mismatch"

    print("KERNEL_OK")
</pallas_src>

<mosaic_0001>
module attributes {stable_mosaic.version = 11 : i64} {
  func.func @_stats_kernel(%arg0: i32, %arg1: memref<16x16xf32, #tpu.memory_space<vmem>>, %arg2: memref<16x128xf32, #tpu.memory_space<vmem>>, %arg3: memref<1x2x128xf32, #tpu.memory_space<vmem>>) attributes {dimension_semantics = [#tpu.dimension_semantics<parallel>], iteration_bounds = array<i64: 1>, scalar_prefetch = 0 : i64, scratch_operands = 0 : i64, tpu.core_type = #tpu.core_type<tc>, window_params = [{transform_indices = @transform_0, window_bounds = array<i64: 16, 16>}, {pipeline_mode = #tpu.pipeline_mode<synchronous>, transform_indices = @transform_1, window_bounds = array<i64: 16, 128>}, {transform_indices = @transform_2, window_bounds = array<i64: 1, 2, 128>}]} {
    %c0 = arith.constant 0 : index
    %c0_0 = arith.constant 0 : index
    %0 = vector.load %arg1[%c0, %c0_0] : memref<16x16xf32, #tpu.memory_space<vmem>>, vector<16x16xf32>
    %c0_1 = arith.constant 0 : index
    %c0_2 = arith.constant 0 : index
    %1 = vector.load %arg2[%c0_1, %c0_2] : memref<16x128xf32, #tpu.memory_space<vmem>>, vector<16x128xf32>
    %cst = arith.constant dense<0.000000e+00> : vector<16x128xf32>
    %2 = tpu.matmul %0, %1, %cst {dimension_numbers = #tpu.dot_dimension_numbers<[1], [0], [0], [1], [0, 0, 1, 1], [], []>} : vector<16x16xf32>, vector<16x128xf32>, vector<16x128xf32> -> vector<16x128xf32>
    %cst_3 = arith.constant dense<0.000000e+00> : vector<128xf32>
    %3 = vector.multi_reduction <add>, %2, %cst_3 [0] : vector<16x128xf32> to vector<128xf32>
    %4 = vector.shape_cast %3 : vector<128xf32> to vector<1x128xf32>
    %c0_4 = arith.constant 0 : index
    %c0_5 = arith.constant 0 : index
    %c0_6 = arith.constant 0 : index
    %5 = vector.load %arg3[%c0_4, %c0_5, %c0_6] : memref<1x2x128xf32, #tpu.memory_space<vmem>>, vector<1x1x128xf32>
    %6 = vector.shape_cast %5 : vector<1x1x128xf32> to vector<1x128xf32>
    %7 = vector.shape_cast %4 : vector<1x128xf32> to vector<1x1x128xf32>
    tpu.vector_store %arg3[%c0_4, %c0_5, %c0_6], %7 {strides = array<i32>} : memref<1x2x128xf32, #tpu.memory_space<vmem>>, vector<1x1x128xf32>,
    %8 = arith.mulf %2, %2 : vector<16x128xf32>
    %cst_7 = arith.constant dense<0.000000e+00> : vector<128xf32>
    %9 = vector.multi_reduction <add>, %8, %cst_7 [0] : vector<16x128xf32> to vector<128xf32>
    %10 = vector.shape_cast %9 : vector<128xf32> to vector<1x128xf32>
    %c0_8 = arith.constant 0 : index
    %c1 = arith.constant 1 : index
    %c0_9 = arith.constant 0 : index
    %11 = vector.load %arg3[%c0_8, %c1, %c0_9] : memref<1x2x128xf32, #tpu.memory_space<vmem>>, vector<1x1x128xf32>
    %12 = vector.shape_cast %11 : vector<1x1x128xf32> to vector<1x128xf32>
    %13 = vector.shape_cast %10 : vector<1x128xf32> to vector<1x1x128xf32>
    tpu.vector_store %arg3[%c0_8, %c1, %c0_9], %13 {strides = array<i32>} : memref<1x2x128xf32, #tpu.memory_space<vmem>>, vector<1x1x128xf32>,
    return
  }
  func.func @transform_0(%arg0: i32) -> (i32, i32) {
    %c0_i32 = arith.constant 0 : i32
    %c0_i32_0 = arith.constant 0 : i32
    return %arg0, %c0_i32 : i32, i32
  }
  func.func @transform_1(%arg0: i32) -> (i32, i32) {
    %c0_i32 = arith.constant 0 : i32
    %c0_i32_0 = arith.constant 0 : i32
    %c0_i32_1 = arith.constant 0 : i32
    return %c0_i32, %c0_i32_0 : i32, i32
  }
  func.func @transform_2(%arg0: i32) -> (i32, i32, i32) {
    %c0_i32 = arith.constant 0 : i32
    %c0_i32_0 = arith.constant 0 : i32
    %c0_i32_1 = arith.constant 0 : i32
    return %arg0, %c0_i32, %c0_i32_0 : i32, i32, i32
  }
}

</mosaic_0001>

<bundles_post_ra>
// kernel: tpu_custom_call.1
= control target key start
LH: loop header
LB: loop body
LE: loop exit
PB: predicated region body
PF: predicated region fallthrough
CT: control target
= control target key end

     0   :  { %7 = vsyncpa [#allocation3], 0  ;;  %s310_s0 = inlined_call_operand.hbm [shape: f32[16,16], index: 0, kind: input, shape index: {}]   ;;  %s311_s1 = inlined_call_operand.hbm [shape: f32[16,128], index: 1, kind: input, shape index: {}]   ;;  %s312_s2 = inlined_call_operand.hbm [shape: f32[1,2,128], index: 2, kind: output, shape index: {}]  }
   0x1   :  { %8 = vsyncpa [#allocation6], 0 }
   0x2   :  { %9 = vsyncpa [#allocation4], 0  ;;  %s254_s9 = smov [#allocation2]   ;;  %s182_s13 = scalar_lea.hbm %s310_s0, 256 }
   0x3   :  { %s15_s10 = sshll.u32 %s254_s9, 4  ;;  %p183_p0 = scmp.ne.s32.totalorder %s310_s0, %s182_s13  ;;  %s16_s10 = int_to_ptr.vmem [resolvable:$true] %s15_s10 }
   0x4   :  { %p186_p1 = scmp.lt.u32.totalorder %s182_s13, %s310_s0 }
   0x6   :  { %p188_p2 = pnand %p186_p1, %p183_p0 }
   0x8   :  { %191 = shalt.err (!%p188_p2)
}
   0x9   :  { %s192_s18 = scalar_lea.vmem %s16_s10, 256  ;;  %p197_p4 = scmp.lt.s32.totalorder %s16_s10, %s16_s10 }
   0xa   :  { %p193_p3 = scmp.ne.s32.totalorder %s16_s10, %s192_s18  ;;  %p198_p5 = scmp.lt.s32.totalorder %s192_s18, %s192_s18 }
   0xc   :  { %p199_p6 = por %p198_p5, %p197_p4 }
   0xe   :  { %p200_p7 = pnand %p199_p6, %p193_p3 }
  0x10   :  { %203 = shalt.err (!%p200_p7)
}
  0x11   :  { %s255_s19 = smov 128   ;;  %s256_s20 = smov 8  }
  0x12   :  { %21 = dma.hbm_to_vmem [thread:$0]  %s310_s0, 256, %s16_s10, [#allocation3], %s255_s19, %s255_s19, %s256_s20  }
  0x13   :  { %s257_s23 = smov [#allocation5]   ;;  %s204_s27 = scalar_lea.hbm %s311_s1, 256 }
  0x14   :  { %s27_s24 = sshll.u32 %s257_s23, 4  ;;  %p205_p8 = scmp.ne.s32.totalorder %s311_s1, %s204_s27  ;;  %s28_s24 = int_to_ptr.vmem [resolvable:$true] %s27_s24 }
  0x15   :  { %p208_p9 = scmp.lt.u32.totalorder %s204_s27, %s311_s1 }
  0x17   :  { %p210_p10 = pnand %p208_p9, %p205_p8 }
  0x19   :  { %213 = shalt.err (!%p210_p10)
}
  0x1a   :  { %s214_s4 = scalar_lea.vmem %s28_s24, 256  ;;  %p219_p12 = scmp.lt.s32.totalorder %s28_s24, %s28_s24 }
  0x1b   :  { %p215_p11 = scmp.ne.s32.totalorder %s28_s24, %s214_s4  ;;  %p220_p13 = scmp.lt.s32.totalorder %s214_s4, %s214_s4 }
  0x1d   :  { %p221_p0 = por %p220_p13, %p219_p12 }
  0x1f   :  { %p222_p1 = pnand %p221_p0, %p215_p11 }
  0x21   :  { %225 = shalt.err (!%p222_p1)
}
  0x22   :  { %33 = dma.hbm_to_vmem [thread:$0]  %s311_s1, 256, %s28_s24, [#allocation6], %s255_s19, %s255_s19, %s256_s20  }
  0x23   :  { %248 = dma.done.wait [#allocation3], 256  }
  0x24   :  { %249 = vsyncadd [#allocation3], 4294967040 }
  0x25   :  { %250 = dma.done.wait [#allocation6], 256  }
  0x26   :  { %251 = vsyncadd [#allocation6], 4294967040  ;;  %vm44_vm0 = vcmask 130048   ;;  %v42_v0 = vld [vmem:[#allocation5] sm:$0xff]  ;;  %v43_v1 = vld [vmem:[#allocation5 + $0x8] sm:$0xff]  ;;  %s258_s1 = smov [#allocation7]  }
  0x27   :  { %v40_v2 = vld [vmem:[#allocation2] sm:$0xff]  ;;  %v173_v3 = vpack.c.bf16 %v43_v1, %v42_v0  ;;  %v41_v4 = vld [vmem:[#allocation2 + $0x8] sm:$0xff]  ;;  %s150_s6 = sshll.u32 %s258_s1, 4  ;;  %s151_s6 = int_to_ptr.vmem [resolvable:$true] %s150_s6 }
  0x28   :  { %170 = vmatprep.mubr.msk.f32.mxu0 %vm44_vm0, %v40_v2  ;;  %s226_s7 = scalar_lea.vmem %s151_s6, 32  ;;  %p231_p3 = scmp.lt.s32.totalorder %s151_s6, %s151_s6 }
  0x29   :  { %174 = vmatprep.subr.bf16.mxu0 %v173_v3  ;;  %p227_p2 = scmp.ne.s32.totalorder %s151_s6, %s226_s7  ;;  %p232_p4 = scmp.lt.s32.totalorder %s226_s7, %s226_s7 }
  0x2a   :  { %176 = vmatpush3.bf16.msra.mxu0 %v173_v3 }
  0x2b   :  { %p233_p5 = por %p232_p4, %p231_p3 }
  0x2d   :  { %171 = vmatmul.mubr.msk.f32.vlgmr.msra.gmra.mrb[0].mxu0 %vm44_vm0, %v41_v4  ;;  %p234_p6 = pnand %p233_p5, %p227_p2 }
 0x100   :  { %v172_v5 = vpop.f32.mrb[0].mxu0 }
 0x101   :  { %v135_v6 = vmul.f32 %v172_v5, %v172_v5  ;;  %v117_v7 = vpop.f32.mrb[1].mxu0 }
 0x102   :  { %v126_v8 = vadd.f32 %v172_v5, %v117_v7  ;;  %v134_v9 = vmul.f32 %v117_v7, %v117_v7 }
 0x104   :  { %v127_v10 = vrot.slane %v126_v8, 4  ;;  %v136_v11 = vadd.f32 %v135_v6, %v134_v9 }
 0x106   :  { %v128_v12 = vadd.f32 %v127_v10, %v126_v8  ;;  %v137_v13 = vrot.slane %v136_v11, 4 }
 0x108   :  { %v129_v14 = vrot.slane %v128_v12, 2  ;;  %v138_v15 = vadd.f32 %v137_v13, %v136_v11 }
 0x10a   :  { %v130_v16 = vadd.f32 %v129_v14, %v128_v12  ;;  %v139_v17 = vrot.slane %v138_v15, 2 }
 0x10c   :  { %v131_v18 = vrot.slane %v130_v16, 1  ;;  %v140_v19 = vadd.f32 %v139_v17, %v138_v15 }
 0x10e   :  { %v132_v20 = vadd.f32 %v131_v18, %v130_v16  ;;  %v141_v21 = vrot.slane %v140_v19, 1 }
 0x110   :  { %133 = vst [vmem:[#allocation7] sm:$0x1] %v132_v20  ;;  %v142_v22 = vadd.f32 %v141_v21, %v140_v19 }
 0x112   :  { %143 = vst [vmem:[#allocation7 + $0x1] sm:$0x1] %v142_v22 }
 0x113   :  { %237 = shalt.err (!%p234_p6)
}
 0x114   :  { %s238_s10 = scalar_lea.hbm %s312_s2, 32 }
 0x115   :  { %p239_p7 = scmp.ne.s32.totalorder %s312_s2, %s238_s10  ;;  %p242_p8 = scmp.lt.u32.totalorder %s238_s10, %s312_s2 }
 0x117   :  { %p244_p9 = pnand %p242_p8, %p239_p7 }
 0x119   :  { %247 = shalt.err (!%p244_p9)
}
 0x11a   :  { %153 = dma.vmem_to_hbm [thread:$0]  %s151_s6, 32, %s312_s2, [#allocation4]  }
 0x11b   :  { %252 = dma.done.wait [#allocation4], 32  }
 0x11c   :  { %253 = vsyncadd [#allocation4], 4294967264 }
 0x11d   :  { %157 = vsyncpa [#allocation3], 1 }
 0x11e   :  { %158 = vsyncpa [#allocation6], 1 }
 0x11f   :  { %159 = vsyncpa [#allocation4], 1 }

</bundles_post_ra>
